<compile_context>
chip_gen: v6e
topology: v6e:2x2x1
jax: 0.10.0
libtpu: 0.0.40
codegen_flags: <defaults>
</compile_context>

<pallas_src>
import functools

import jax
import jax.numpy as jnp
from jax import lax
from jax.experimental import pallas as pl
from jax.experimental.pallas import tpu as pltpu


# ----------------------------- kernel helpers --------------------------------

def _layernorm(x, gamma, beta, eps):
    # Matches the custom PyTorch module: unbiased std (N-1), eps added to std.
    # Exact divide (review: keep approx reciprocal off the residual stream).
    mean = jnp.mean(x, axis=-1, keepdims=True)
    d = x - mean
    var = jnp.sum(d * d, axis=-1, keepdims=True) / (x.shape[-1] - 1)
    return gamma * d / (jnp.sqrt(var) + eps) + beta


def _softmax(x, approx):
    m = jnp.max(x, axis=-1, keepdims=True)
    e = jnp.exp(x - m)
    s = jnp.sum(e, axis=-1, keepdims=True)
    if approx:                               # bf16 fast path: EUP reciprocal
        return e * pl.reciprocal(s, approx=True)
    return e / s                             # f32 check path: exact


def _shift_prev_next(x):
    # prev[t] = x[t-1] (zero at t=0); next[t] = x[t+1] (zero at t=S-1).
    # Shifts ride the XLU roll slot; boundary rows are masked on the VPU.
    S = x.shape[0]
    row = lax.broadcasted_iota(jnp.int32, x.shape, 0)
    prev = jnp.where(row == 0, 0.0, pltpu.roll(x, shift=1, axis=0))
    nxt = jnp.where(row == S - 1, 0.0, pltpu.roll(x, shift=S - 1, axis=0))
    return prev, nxt


def _conv3_both(x, w_ref, b_ref, cdt):
    # x: (S, Cin) f32; w_ref: (3*Cin, Cout) rows = [W0 (prev) | W1 (center) | W2 (next)]
    # Conv1d(kernel_size=3, pad=(1,1)):  out[t] = x[t-1]@W0 + x[t]@W1 + x[t+1]@W2 + b
    S, Cin = x.shape
    prev, nxt = _shift_prev_next(x)
    # TODO(synk): rolling directly in compute_dtype would also halve XLU roll traffic.
    prev = prev.astype(cdt)
    nxt = nxt.astype(cdt)
    xc = x.astype(cdt)
    if Cin >= 256:
        # Contraction already fills the MXU: three accumulating matmuls, no
        # materialized (S, 3*Cin) concat.
        out = jnp.dot(prev, w_ref[0:Cin, :], preferred_element_type=jnp.float32)
        out = out + jnp.dot(xc, w_ref[Cin:2 * Cin, :], preferred_element_type=jnp.float32)
        out = out + jnp.dot(nxt, w_ref[2 * Cin:, :], preferred_element_type=jnp.float32)
    else:
        # Small Cin: fuse the three taps on the contraction axis (single MXU call).
        # Concat done in compute dtype -> half the copied bytes (f32 accumulation).
        taps = jnp.concatenate([prev, xc, nxt], axis=1)
        out = jnp.dot(taps, w_ref[...], preferred_element_type=jnp.float32)
    return out + b_ref[...]


# ------------------------------- the kernel ----------------------------------

def encoder_layer_kernel(
    x_ref,                       # (1, S, H)
    g1_ref, be1_ref,             # (1, H)  LayerNorm (pre-MHA)
    wqkv_ref,                    # (NH, H, 2*hd_k + hd_v)  head-batched fused Q|K|V
    wo_ref,                      # (NH, hd_v, H)           per-head output projection
    g2_ref, be2_ref,             # (1, H)  LayerNorm (pre-FFN)
    cw1_ref, cb1_ref,            # (3*H, F), (1, F)
    cw2_ref, cb2_ref,            # (3*F, H), (1, H)
    out_ref,                     # (1, S, H)
    *, num_heads, hd_k, hd_v, eps, compute_dtype,
):
    cdt = compute_dtype
    exact = jnp.dtype(cdt) == jnp.dtype(jnp.float32)

    x = x_ref[0].astype(jnp.float32)                       # (S, H)
    S, H = x.shape

    # ---- LayerNorm (pre-attention), f32 ----
    xn = _layernorm(x, g1_ref[...], be1_ref[...], eps)

    # ---- Multi-head self-attention (dropout=0, mask=None) ----
    # Head-batched contractions: no per-head Python loop, no unaligned per-head
    # lane slices, no lane-axis concat, no in-kernel reshape/transpose.
    xnb = jnp.broadcast_to(xn.astype(cdt)[None], (num_heads, S, H))
    qkv = jnp.einsum("hsd,hde->hse", xnb, wqkv_ref[...],
                     preferred_element_type=jnp.float32)   # (NH, S, 2hk+hv) f32
    # query scale is pre-folded into the Q columns of wqkv (wrapper).
    qh = qkv[:, :, :hd_k].astype(cdt)                      # (NH, S, hd_k)
    kh = qkv[:, :, hd_k:2 * hd_k].astype(cdt)              # (NH, S, hd_k)
    vh = qkv[:, :, 2 * hd_k:].astype(cdt)                  # (NH, S, hd_v)

    logits = jnp.einsum("hqd,hkd->hqk", qh, kh,
                        preferred_element_type=jnp.float32)       # (NH, S, S)
    w = _softmax(logits, approx=not exact)                        # f32
    ctx = jnp.einsum("hqk,hkd->hqd", w.astype(cdt), vh,
                     preferred_element_type=jnp.float32)          # (NH, S, hd_v)
    # Per-head output projection + reduce over heads == concat(ctx_heads) @ Wo.
    yh = jnp.einsum("hse,heo->hso", ctx.astype(cdt), wo_ref[...],
                    preferred_element_type=jnp.float32)           # (NH, S, H)
    y = jnp.sum(yh, axis=0)                                        # (S, H)

    x2 = x + y                                   # layer dropout p=0 -> identity

    # ---- LayerNorm (pre-FFN), f32 ----
    xn2 = _layernorm(x2, g2_ref[...], be2_ref[...], eps)

    # ---- Positionwise FFN: conv3 -> ReLU -> conv3 -> ReLU (relu_dropout=0) ----
    h1 = jnp.maximum(_conv3_both(xn2, cw1_ref, cb1_ref, cdt), 0.0)
    h2 = jnp.maximum(_conv3_both(h1, cw2_ref, cb2_ref, cdt), 0.0)

    out_ref[0] = (x2 + h2).astype(out_ref.dtype)


# ------------------------------- wrapper --------------------------------------

def _vmem_limit_bytes():
    # Generation-aware VMEM budget: ~3/4 of physical, capped at 100 MiB
    # (v5e/v6e: 96 MiB of 128; v7x: 48 MiB of 64).  Falls back to 64 MiB.
    try:
        cap = pltpu.get_tpu_info().vmem_capacity_bytes
        return int(min(cap * 3 // 4, 100 * 1024 * 1024))
    except Exception:
        return 64 * 1024 * 1024


def encoder_layer(x, p, *, num_heads, eps=1e-6, compute_dtype=jnp.bfloat16):
    B, S, H = x.shape
    nh, _, hd_k = p["wq"].shape
    hd_v = p["wv"].shape[2]
    F = p["cw1"].shape[2]
    assert nh == num_heads
    cdt = compute_dtype
    scale = hd_k ** -0.5

    # Head-batched fused QKV weight with the query scale folded into Q columns.
    wqkv3 = jnp.concatenate([p["wq"] * scale, p["wk"], p["wv"]],
                            axis=2).astype(cdt)              # (NH, H, 2hk+hv)
    wo3 = p["wo"].astype(cdt)                                # (NH, hd_v, H)
    # Fuse the three conv taps along the contraction axis: rows [W0 | W1 | W2].
    cw1 = p["cw1"].reshape(3 * H, F).astype(cdt)             # (3H, F)
    cw2 = p["cw2"].reshape(3 * F, H).astype(cdt)             # (3F, H)

    kernel = functools.partial(encoder_layer_kernel, num_heads=num_heads,
                               hd_k=hd_k, hd_v=hd_v, eps=eps, compute_dtype=cdt)

    def rep(shape):
        # Grid-invariant (weight) block.
        # TODO(synk): pipeline_mode=pl.Buffered(1) would avoid double-buffering
        # these constant blocks (a full weight copy of VMEM at real sizes).
        n = len(shape)
        return pl.BlockSpec(shape, lambda b, _n=n: (0,) * _n)

    grid_spec = pltpu.PrefetchScalarGridSpec(
        num_scalar_prefetch=0,
        grid=(B,),
        in_specs=[
            pl.BlockSpec((1, S, H), lambda b: (b, 0, 0)),
            rep((1, H)), rep((1, H)),
            rep((num_heads, H, 2 * hd_k + hd_v)),
            rep((num_heads, hd_v, H)),
            rep((1, H)), rep((1, H)),
            rep((3 * H, F)), rep((1, F)),
            rep((3 * F, H)), rep((1, H)),
        ],
        # TODO(synk): H < 128 makes every store a masked partial store; pad H to
        # a multiple of 128 (or block several batch rows) for lane-dense output.
        out_specs=pl.BlockSpec((1, S, H), lambda b: (b, 0, 0)),
    )

    return pl.pallas_call(
        kernel,
        out_shape=jax.ShapeDtypeStruct((B, S, H), x.dtype),
        grid_spec=grid_spec,
        compiler_params=pltpu.CompilerParams(
            # "parallel" over batch: v7x's two TensorCores both get work for B>=2.
            dimension_semantics=("parallel",),
            vmem_limit_bytes=_vmem_limit_bytes(),
        ),
    )(x, p["g1"], p["be1"], wqkv3, wo3, p["g2"], p["be2"],
      cw1, p["cb1"], cw2, p["cb2"])


# ---------------------------- pure-JAX reference ------------------------------

def encoder_layer_reference(x, p, num_heads, eps=1e-6):
    # Independent reference on the *unfused* per-head / per-tap parameters,
    # with HIGHEST matmul precision so the f32 kernel path can be checked tightly.
    P = jax.lax.Precision.HIGHEST

    def ln(t, g, b):
        mean = t.mean(-1, keepdims=True)
        var = ((t - mean) ** 2).sum(-1, keepdims=True) / (t.shape[-1] - 1)
        return g * (t - mean) / (jnp.sqrt(var) + eps) + b

    hd_k = p["wq"].shape[2]
    scale = hd_k ** -0.5

    xn = ln(x, p["g1"][0], p["be1"][0])
    y = jnp.zeros_like(x)
    for h in range(num_heads):
        q = jnp.matmul(xn, p["wq"][h], precision=P) * scale
        k = jnp.matmul(xn, p["wk"][h], precision=P)
        v = jnp.matmul(xn, p["wv"][h], precision=P)
        logits = jnp.einsum("bqd,bkd->bqk", q, k, precision=P)
        w = jax.nn.softmax(logits, axis=-1)
        ctx = jnp.einsum("bqk,bkd->bqd", w, v, precision=P)
        y = y + jnp.matmul(ctx, p["wo"][h], precision=P)
    x2 = x + y
    xn2 = ln(x2, p["g2"][0], p["be2"][0])

    def conv3(t, w3, b):
        prev = jnp.pad(t, ((0, 0), (1, 0), (0, 0)))[:, :-1]
        nxt = jnp.pad(t, ((0, 0), (0, 1), (0, 0)))[:, 1:]
        return (jnp.matmul(prev, w3[0], precision=P)
                + jnp.matmul(t, w3[1], precision=P)
                + jnp.matmul(nxt, w3[2], precision=P) + b)

    h1 = jax.nn.relu(conv3(xn2, p["cw1"], p["cb1"][0]))
    h2 = jax.nn.relu(conv3(h1, p["cw2"], p["cb2"][0]))
    return x2 + h2


# ---------------------------------- main ---------------------------------------

if __name__ == "__main__":
    B, S, H = 2, 8, 32          # batch, seq, hidden_size
    NH = 4                      # num_heads
    DK = DV = 32                # total_key_depth / total_value_depth
    HD_K, HD_V = DK // NH, DV // NH
    F = 64                      # filter_size

    key = jax.random.PRNGKey(0)
    ks = jax.random.split(key, 14)
    sc = 0.1
    params = dict(
        g1=1.0 + 0.1 * jax.random.normal(ks[0], (1, H), jnp.float32),
        be1=0.1 * jax.random.normal(ks[1], (1, H), jnp.float32),
        wq=sc * jax.random.normal(ks[2], (NH, H, HD_K), jnp.float32),
        wk=sc * jax.random.normal(ks[3], (NH, H, HD_K), jnp.float32),
        wv=sc * jax.random.normal(ks[4], (NH, H, HD_V), jnp.float32),
        wo=sc * jax.random.normal(ks[5], (NH, HD_V, H), jnp.float32),
        g2=1.0 + 0.1 * jax.random.normal(ks[6], (1, H), jnp.float32),
        be2=0.1 * jax.random.normal(ks[7], (1, H), jnp.float32),
        cw1=sc * jax.random.normal(ks[8], (3, H, F), jnp.float32),
        cb1=0.1 * jax.random.normal(ks[9], (1, F), jnp.float32),
        cw2=sc * jax.random.normal(ks[10], (3, F, H), jnp.float32),
        cb2=0.1 * jax.random.normal(ks[11], (1, H), jnp.float32),
    )
    x = jax.random.normal(ks[12], (B, S, H), jnp.float32)

    # f32 compute path: exact LN / softmax divides -> tight structural check.
    out_f32 = encoder_layer(x, params, num_heads=NH, compute_dtype=jnp.float32)
    # bf16 compute path (default / fast path): f32 accumulation, looser tolerance.
    out_bf16 = encoder_layer(x, params, num_heads=NH, compute_dtype=jnp.bfloat16)
    out_f32, out_bf16 = jax.block_until_ready((out_f32, out_bf16))

    ref = encoder_layer_reference(x, params, NH)
    assert out_f32.shape == (B, S, H) and out_bf16.shape == (B, S, H)
    err_f32 = float(jnp.max(jnp.abs(out_f32 - ref)))
    err_bf16 = float(jnp.max(jnp.abs(out_bf16 - ref)))
    assert jnp.allclose(out_f32, ref, atol=5e-3, rtol=5e-3), f"f32 max abs err {err_f32}"
    assert jnp.allclose(out_bf16, ref, atol=8e-2, rtol=8e-2), f"bf16 max abs err {err_bf16}"

    print("KERNEL_OK")
</pallas_src>

<mosaic_0001>
module attributes {stable_mosaic.version = 11 : i64} {
  func.func @encoder_layer_kernel(%arg0: i32, %arg1: memref<1x8x32xf32, #tpu.memory_space<vmem>>, %arg2: memref<1x32xf32, #tpu.memory_space<vmem>>, %arg3: memref<1x32xf32, #tpu.memory_space<vmem>>, %arg4: memref<4x32x24xf32, #tpu.memory_space<vmem>>, %arg5: memref<4x8x32xf32, #tpu.memory_space<vmem>>, %arg6: memref<1x32xf32, #tpu.memory_space<vmem>>, %arg7: memref<1x32xf32, #tpu.memory_space<vmem>>, %arg8: memref<96x64xf32, #tpu.memory_space<vmem>>, %arg9: memref<1x64xf32, #tpu.memory_space<vmem>>, %arg10: memref<192x32xf32, #tpu.memory_space<vmem>>, %arg11: memref<1x32xf32, #tpu.memory_space<vmem>>, %arg12: memref<1x8x32xf32, #tpu.memory_space<vmem>>) attributes {dimension_semantics = [#tpu.dimension_semantics<parallel>], iteration_bounds = array<i64: 2>, scalar_prefetch = 0 : i64, scratch_operands = 0 : i64, tpu.core_type = #tpu.core_type<tc>, window_params = [{transform_indices = @transform_0, window_bounds = array<i64: 1, 8, 32>}, {pipeline_mode = #tpu.pipeline_mode<synchronous>, transform_indices = @transform_1, window_bounds = array<i64: 1, 32>}, {pipeline_mode = #tpu.pipeline_mode<synchronous>, transform_indices = @transform_2, window_bounds = array<i64: 1, 32>}, {pipeline_mode = #tpu.pipeline_mode<synchronous>, transform_indices = @transform_3, window_bounds = array<i64: 4, 32, 24>}, {pipeline_mode = #tpu.pipeline_mode<synchronous>, transform_indices = @transform_4, window_bounds = array<i64: 4, 8, 32>}, {pipeline_mode = #tpu.pipeline_mode<synchronous>, transform_indices = @transform_5, window_bounds = array<i64: 1, 32>}, {pipeline_mode = #tpu.pipeline_mode<synchronous>, transform_indices = @transform_6, window_bounds = array<i64: 1, 32>}, {pipeline_mode = #tpu.pipeline_mode<synchronous>, transform_indices = @transform_7, window_bounds = array<i64: 96, 64>}, {pipeline_mode = #tpu.pipeline_mode<synchronous>, transform_indices = @transform_8, window_bounds = array<i64: 1, 64>}, {pipeline_mode = #tpu.pipeline_mode<synchronous>, transform_indices = @transform_9, window_bounds = array<i64: 192, 32>}, {pipeline_mode = #tpu.pipeline_mode<synchronous>, transform_indices = @transform_10, window_bounds = array<i64: 1, 32>}, {transform_indices = @transform_11, window_bounds = array<i64: 1, 8, 32>}]} {
    %c0 = arith.constant 0 : index
    %c0_0 = arith.constant 0 : index
    %c0_1 = arith.constant 0 : index
    %0 = vector.load %arg1[%c0, %c0_0, %c0_1] : memref<1x8x32xf32, #tpu.memory_space<vmem>>, vector<1x8x32xf32>
    %1 = vector.shape_cast %0 : vector<1x8x32xf32> to vector<8x32xf32>
    %c0_2 = arith.constant 0 : index
    %c0_3 = arith.constant 0 : index
    %2 = vector.load %arg2[%c0_2, %c0_3] : memref<1x32xf32, #tpu.memory_space<vmem>>, vector<1x32xf32>
    %c0_4 = arith.constant 0 : index
    %c0_5 = arith.constant 0 : index
    %3 = vector.load %arg3[%c0_4, %c0_5] : memref<1x32xf32, #tpu.memory_space<vmem>>, vector<1x32xf32>
    %cst = arith.constant dense<0.000000e+00> : vector<8xf32>
    %4 = vector.multi_reduction <add>, %1, %cst [1] : vector<8x32xf32> to vector<8xf32>
    %5 = vector.shape_cast %4 : vector<8xf32> to vector<8x1xf32>
    %cst_6 = arith.constant 3.200000e+01 : f32
    %6 = vector.broadcast %cst_6 : f32 to vector<8x1xf32>
    %7 = arith.divf %5, %6 : vector<8x1xf32>
    %8 = vector.broadcast %7 : vector<8x1xf32> to vector<8x32xf32>
    %9 = arith.subf %1, %8 : vector<8x32xf32>
    %10 = arith.mulf %9, %9 : vector<8x32xf32>
    %cst_7 = arith.constant dense<0.000000e+00> : vector<8xf32>
    %11 = vector.multi_reduction <add>, %10, %cst_7 [1] : vector<8x32xf32> to vector<8xf32>
    %12 = vector.shape_cast %11 : vector<8xf32> to vector<8x1xf32>
    %cst_8 = arith.constant 3.100000e+01 : f32
    %13 = vector.broadcast %cst_8 : f32 to vector<8x1xf32>
    %14 = arith.divf %12, %13 : vector<8x1xf32>
    %15 = vector.broadcast %2 : vector<1x32xf32> to vector<8x32xf32>
    %16 = arith.mulf %15, %9 : vector<8x32xf32>
    %17 = math.sqrt %14 : vector<8x1xf32>
    %cst_9 = arith.constant 9.99999997E-7 : f32
    %18 = vector.broadcast %cst_9 : f32 to vector<8x1xf32>
    %19 = arith.addf %17, %18 : vector<8x1xf32>
    %20 = vector.broadcast %19 : vector<8x1xf32> to vector<8x32xf32>
    %21 = arith.divf %16, %20 : vector<8x32xf32>
    %22 = vector.broadcast %3 : vector<1x32xf32> to vector<8x32xf32>
    %23 = arith.addf %21, %22 : vector<8x32xf32>
    %24 = vector.shape_cast %23 : vector<8x32xf32> to vector<1x8x32xf32>
    %25 = vector.shape_cast %24 : vector<1x8x32xf32> to vector<1x8x32xf32>
    %26 = vector.broadcast %25 : vector<1x8x32xf32> to vector<4x8x32xf32>
    %c0_10 = arith.constant 0 : index
    %c0_11 = arith.constant 0 : index
    %c0_12 = arith.constant 0 : index
    %27 = vector.load %arg4[%c0_10, %c0_11, %c0_12] : memref<4x32x24xf32, #tpu.memory_space<vmem>>, vector<4x32x24xf32>
    "tpu.trace_start"() <{level = 10 : i32, message = "hsd,hde->hse"}> : () -> ()
    %cst_13 = arith.constant dense<0.000000e+00> : vector<4x8x24xf32>
    %28 = tpu.matmul %26, %27, %cst_13 {dimension_numbers = #tpu.dot_dimension_numbers<[2], [1], [1], [2], [0, 0, 0, 1, 1, 2], [0], [0]>} : vector<4x8x32xf32>, vector<4x32x24xf32>, vector<4x8x24xf32> -> vector<4x8x24xf32>
    "tpu.trace_stop"() : () -> ()
    %29 = vector.extract_strided_slice %28 {offsets = [0, 0, 0], sizes = [4, 8, 8], strides = [1, 1, 1]} : vector<4x8x24xf32> to vector<4x8x8xf32>
    %30 = vector.extract_strided_slice %28 {offsets = [0, 0, 8], sizes = [4, 8, 8], strides = [1, 1, 1]} : vector<4x8x24xf32> to vector<4x8x8xf32>
    %31 = vector.extract_strided_slice %28 {offsets = [0, 0, 16], sizes = [4, 8, 8], strides = [1, 1, 1]} : vector<4x8x24xf32> to vector<4x8x8xf32>
    "tpu.trace_start"() <{level = 10 : i32, message = "hqd,hkd->hqk"}> : () -> ()
    %cst_14 = arith.constant dense<0.000000e+00> : vector<4x8x8xf32>
    %32 = tpu.matmul %29, %30, %cst_14 {dimension_numbers = #tpu.dot_dimension_numbers<[2], [2], [1], [1], [0, 0, 0, 1, 1, 1], [0], [0]>} : vector<4x8x8xf32>, vector<4x8x8xf32>, vector<4x8x8xf32> -> vector<4x8x8xf32>
    "tpu.trace_stop"() : () -> ()
    %cst_15 = arith.constant dense<0xFF800000> : vector<4x8xf32>
    %33 = vector.multi_reduction <maximumf>, %32, %cst_15 [2] : vector<4x8x8xf32> to vector<4x8xf32>
    %34 = vector.shape_cast %33 : vector<4x8xf32> to vector<4x8x1xf32>
    %35 = vector.broadcast %34 : vector<4x8x1xf32> to vector<4x8x8xf32>
    %36 = arith.subf %32, %35 : vector<4x8x8xf32>
    %37 = math.exp %36 : vector<4x8x8xf32>
    %cst_16 = arith.constant dense<0.000000e+00> : vector<4x8xf32>
    %38 = vector.multi_reduction <add>, %37, %cst_16 [2] : vector<4x8x8xf32> to vector<4x8xf32>
    %39 = vector.shape_cast %38 : vector<4x8xf32> to vector<4x8x1xf32>
    %40 = vector.broadcast %39 : vector<4x8x1xf32> to vector<4x8x8xf32>
    %41 = arith.divf %37, %40 : vector<4x8x8xf32>
    "tpu.trace_start"() <{level = 10 : i32, message = "hqk,hkd->hqd"}> : () -> ()
    %cst_17 = arith.constant dense<0.000000e+00> : vector<4x8x8xf32>
    %42 = tpu.matmul %41, %31, %cst_17 {dimension_numbers = #tpu.dot_dimension_numbers<[2], [1], [1], [2], [0, 0, 0, 1, 1, 2], [0], [0]>} : vector<4x8x8xf32>, vector<4x8x8xf32>, vector<4x8x8xf32> -> vector<4x8x8xf32>
    "tpu.trace_stop"() : () -> ()
    %c0_18 = arith.constant 0 : index
    %c0_19 = arith.constant 0 : index
    %c0_20 = arith.constant 0 : index
    %43 = vector.load %arg5[%c0_18, %c0_19, %c0_20] : memref<4x8x32xf32, #tpu.memory_space<vmem>>, vector<4x8x32xf32>
    "tpu.trace_start"() <{level = 10 : i32, message = "hse,heo->hso"}> : () -> ()
    %cst_21 = arith.constant dense<0.000000e+00> : vector<4x8x32xf32>
    %44 = tpu.matmul %42, %43, %cst_21 {dimension_numbers = #tpu.dot_dimension_numbers<[2], [1], [1], [2], [0, 0, 0, 1, 1, 2], [0], [0]>} : vector<4x8x8xf32>, vector<4x8x32xf32>, vector<4x8x32xf32> -> vector<4x8x32xf32>
    "tpu.trace_stop"() : () -> ()
    %cst_22 = arith.constant dense<0.000000e+00> : vector<8x32xf32>
    %45 = vector.multi_reduction <add>, %44, %cst_22 [0] : vector<4x8x32xf32> to vector<8x32xf32>
    %46 = arith.addf %1, %45 : vector<8x32xf32>
    %c0_23 = arith.constant 0 : index
    %c0_24 = arith.constant 0 : index
    %47 = vector.load %arg6[%c0_23, %c0_24] : memref<1x32xf32, #tpu.memory_space<vmem>>, vector<1x32xf32>
    %c0_25 = arith.constant 0 : index
    %c0_26 = arith.constant 0 : index
    %48 = vector.load %arg7[%c0_25, %c0_26] : memref<1x32xf32, #tpu.memory_space<vmem>>, vector<1x32xf32>
    %cst_27 = arith.constant dense<0.000000e+00> : vector<8xf32>
    %49 = vector.multi_reduction <add>, %46, %cst_27 [1] : vector<8x32xf32> to vector<8xf32>
    %50 = vector.shape_cast %49 : vector<8xf32> to vector<8x1xf32>
    %cst_28 = arith.constant 3.200000e+01 : f32
    %51 = vector.broadcast %cst_28 : f32 to vector<8x1xf32>
    %52 = arith.divf %50, %51 : vector<8x1xf32>
    %53 = vector.broadcast %52 : vector<8x1xf32> to vector<8x32xf32>
    %54 = arith.subf %46, %53 : vector<8x32xf32>
    %55 = arith.mulf %54, %54 : vector<8x32xf32>
    %cst_29 = arith.constant dense<0.000000e+00> : vector<8xf32>
    %56 = vector.multi_reduction <add>, %55, %cst_29 [1] : vector<8x32xf32> to vector<8xf32>
    %57 = vector.shape_cast %56 : vector<8xf32> to vector<8x1xf32>
    %cst_30 = arith.constant 3.100000e+01 : f32
    %58 = vector.broadcast %cst_30 : f32 to vector<8x1xf32>
    %59 = arith.divf %57, %58 : vector<8x1xf32>
    %60 = vector.broadcast %47 : vector<1x32xf32> to vector<8x32xf32>
    %61 = arith.mulf %60, %54 : vector<8x32xf32>
    %62 = math.sqrt %59 : vector<8x1xf32>
    %cst_31 = arith.constant 9.99999997E-7 : f32
    %63 = vector.broadcast %cst_31 : f32 to vector<8x1xf32>
    %64 = arith.addf %62, %63 : vector<8x1xf32>
    %65 = vector.broadcast %64 : vector<8x1xf32> to vector<8x32xf32>
    %66 = arith.divf %61, %65 : vector<8x32xf32>
    %67 = vector.broadcast %48 : vector<1x32xf32> to vector<8x32xf32>
    %68 = arith.addf %66, %67 : vector<8x32xf32>
    %69 = tpu.iota {dimensions = array<i32: 0>} : vector<8x32xi32>
    %c0_i32 = arith.constant 0 : i32
    %70 = vector.broadcast %c0_i32 : i32 to vector<8x32xi32>
    %71 = arith.cmpi eq, %69, %70 : vector<8x32xi32>
    %c1_i32 = arith.constant 1 : i32
    %72 = tpu.dynamic_rotate %68 by %c1_i32 dim 0 : vector<8x32xf32>, i32 -> vector<8x32xf32>
    %cst_32 = arith.constant 0.000000e+00 : f32
    %73 = vector.broadcast %cst_32 : f32 to vector<8x32xf32>
    %74 = arith.select %71, %73, %72 : vector<8x32xi1>, vector<8x32xf32>
    %c7_i32 = arith.constant 7 : i32
    %75 = vector.broadcast %c7_i32 : i32 to vector<8x32xi32>
    %76 = arith.cmpi eq, %69, %75 : vector<8x32xi32>
    %c7_i32_33 = arith.constant 7 : i32
    %77 = tpu.dynamic_rotate %68 by %c7_i32_33 dim 0 : vector<8x32xf32>, i32 -> vector<8x32xf32>
    %cst_34 = arith.constant 0.000000e+00 : f32
    %78 = vector.broadcast %cst_34 : f32 to vector<8x32xf32>
    %79 = arith.select %76, %78, %77 : vector<8x32xi1>, vector<8x32xf32>
    %80 = tpu.concatenate %74, %68, %79 in 1 : vector<8x32xf32>, vector<8x32xf32>, vector<8x32xf32> -> vector<8x96xf32>
    %c0_35 = arith.constant 0 : index
    %c0_36 = arith.constant 0 : index
    %81 = vector.load %arg8[%c0_35, %c0_36] : memref<96x64xf32, #tpu.memory_space<vmem>>, vector<96x64xf32>
    %cst_37 = arith.constant dense<0.000000e+00> : vector<8x64xf32>
    %82 = tpu.matmul %80, %81, %cst_37 {dimension_numbers = #tpu.dot_dimension_numbers<[1], [0], [0], [1], [0, 0, 1, 1], [], []>} : vector<8x96xf32>, vector<96x64xf32>, vector<8x64xf32> -> vector<8x64xf32>
    %c0_38 = arith.constant 0 : index
    %c0_39 = arith.constant 0 : index
    %83 = vector.load %arg9[%c0_38, %c0_39] : memref<1x64xf32, #tpu.memory_space<vmem>>, vector<1x64xf32>
    %84 = vector.broadcast %83 : vector<1x64xf32> to vector<8x64xf32>
    %85 = arith.addf %82, %84 : vector<8x64xf32>
    %cst_40 = arith.constant 0.000000e+00 : f32
    %86 = vector.broadcast %cst_40 : f32 to vector<8x64xf32>
    %87 = arith.maximumf %85, %86 : vector<8x64xf32>
    %88 = tpu.iota {dimensions = array<i32: 0>} : vector<8x64xi32>
    %c0_i32_41 = arith.constant 0 : i32
    %89 = vector.broadcast %c0_i32_41 : i32 to vector<8x64xi32>
    %90 = arith.cmpi eq, %88, %89 : vector<8x64xi32>
    %c1_i32_42 = arith.constant 1 : i32
    %91 = tpu.dynamic_rotate %87 by %c1_i32_42 dim 0 : vector<8x64xf32>, i32 -> vector<8x64xf32>
    %cst_43 = arith.constant 0.000000e+00 : f32
    %92 = vector.broadcast %cst_43 : f32 to vector<8x64xf32>
    %93 = arith.select %90, %92, %91 : vector<8x64xi1>, vector<8x64xf32>
    %c7_i32_44 = arith.constant 7 : i32
    %94 = vector.broadcast %c7_i32_44 : i32 to vector<8x64xi32>
    %95 = arith.cmpi eq, %88, %94 : vector<8x64xi32>
    %c7_i32_45 = arith.constant 7 : i32
    %96 = tpu.dynamic_rotate %87 by %c7_i32_45 dim 0 : vector<8x64xf32>, i32 -> vector<8x64xf32>
    %cst_46 = arith.constant 0.000000e+00 : f32
    %97 = vector.broadcast %cst_46 : f32 to vector<8x64xf32>
    %98 = arith.select %95, %97, %96 : vector<8x64xi1>, vector<8x64xf32>
    %99 = tpu.concatenate %93, %87, %98 in 1 : vector<8x64xf32>, vector<8x64xf32>, vector<8x64xf32> -> vector<8x192xf32>
    %c0_47 = arith.constant 0 : index
    %c0_48 = arith.constant 0 : index
    %100 = vector.load %arg10[%c0_47, %c0_48] : memref<192x32xf32, #tpu.memory_space<vmem>>, vector<192x32xf32>
    %cst_49 = arith.constant dense<0.000000e+00> : vector<8x32xf32>
    %101 = tpu.matmul %99, %100, %cst_49 {dimension_numbers = #tpu.dot_dimension_numbers<[1], [0], [0], [1], [0, 0, 1, 1], [], []>} : vector<8x192xf32>, vector<192x32xf32>, vector<8x32xf32> -> vector<8x32xf32>
    %c0_50 = arith.constant 0 : index
    %c0_51 = arith.constant 0 : index
    %102 = vector.load %arg11[%c0_50, %c0_51] : memref<1x32xf32, #tpu.memory_space<vmem>>, vector<1x32xf32>
    %103 = vector.broadcast %102 : vector<1x32xf32> to vector<8x32xf32>
    %104 = arith.addf %101, %103 : vector<8x32xf32>
    %cst_52 = arith.constant 0.000000e+00 : f32
    %105 = vector.broadcast %cst_52 : f32 to vector<8x32xf32>
    %106 = arith.maximumf %104, %105 : vector<8x32xf32>
    %107 = arith.addf %46, %106 : vector<8x32xf32>
    %c0_53 = arith.constant 0 : index
    %c0_54 = arith.constant 0 : index
    %c0_55 = arith.constant 0 : index
    %108 = vector.load %arg12[%c0_53, %c0_54, %c0_55] : memref<1x8x32xf32, #tpu.memory_space<vmem>>, vector<1x8x32xf32>
    %109 = vector.shape_cast %108 : vector<1x8x32xf32> to vector<8x32xf32>
    %110 = vector.shape_cast %107 : vector<8x32xf32> to vector<1x8x32xf32>
    tpu.vector_store %arg12[%c0_53, %c0_54, %c0_55], %110 {strides = array<i32>} : memref<1x8x32xf32, #tpu.memory_space<vmem>>, vector<1x8x32xf32>,
    return
  }
  func.func @transform_0(%arg0: i32) -> (i32, i32, i32) {
    %c0_i32 = arith.constant 0 : i32
    %c0_i32_0 = arith.constant 0 : i32
    %c0_i32_1 = arith.constant 0 : i32
    return %arg0, %c0_i32, %c0_i32_0 : i32, i32, i32
  }
  func.func @transform_1(%arg0: i32) -> (i32, i32) {
    %c0_i32 = arith.constant 0 : i32
    %c0_i32_0 = arith.constant 0 : i32
    %c0_i32_1 = arith.constant 0 : i32
    return %c0_i32, %c0_i32_0 : i32, i32
  }
  func.func @transform_2(%arg0: i32) -> (i32, i32) {
    %c0_i32 = arith.constant 0 : i32
    %c0_i32_0 = arith.constant 0 : i32
    %c0_i32_1 = arith.constant 0 : i32
    return %c0_i32, %c0_i32_0 : i32, i32
  }
  func.func @transform_3(%arg0: i32) -> (i32, i32, i32) {
    %c0_i32 = arith.constant 0 : i32
    %c0_i32_0 = arith.constant 0 : i32
    %c0_i32_1 = arith.constant 0 : i32
    %c0_i32_2 = arith.constant 0 : i32
    return %c0_i32, %c0_i32_0, %c0_i32_1 : i32, i32, i32
  }
  func.func @transform_4(%arg0: i32) -> (i32, i32, i32) {
    %c0_i32 = arith.constant 0 : i32
    %c0_i32_0 = arith.constant 0 : i32
    %c0_i32_1 = arith.constant 0 : i32
    %c0_i32_2 = arith.constant 0 : i32
    return %c0_i32, %c0_i32_0, %c0_i32_1 : i32, i32, i32
  }
  func.func @transform_5(%arg0: i32) -> (i32, i32) {
    %c0_i32 = arith.constant 0 : i32
    %c0_i32_0 = arith.constant 0 : i32
    %c0_i32_1 = arith.constant 0 : i32
    return %c0_i32, %c0_i32_0 : i32, i32
  }
  func.func @transform_6(%arg0: i32) -> (i32, i32) {
    %c0_i32 = arith.constant 0 : i32
    %c0_i32_0 = arith.constant 0 : i32
    %c0_i32_1 = arith.constant 0 : i32
    return %c0_i32, %c0_i32_0 : i32, i32
  }
  func.func @transform_7(%arg0: i32) -> (i32, i32) {
    %c0_i32 = arith.constant 0 : i32
    %c0_i32_0 = arith.constant 0 : i32
    %c0_i32_1 = arith.constant 0 : i32
    return %c0_i32, %c0_i32_0 : i32, i32
  }
  func.func @transform_8(%arg0: i32) -> (i32, i32) {
    %c0_i32 = arith.constant 0 : i32
    %c0_i32_0 = arith.constant 0 : i32
    %c0_i32_1 = arith.constant 0 : i32
    return %c0_i32, %c0_i32_0 : i32, i32
  }
  func.func @transform_9(%arg0: i32) -> (i32, i32) {
    %c0_i32 = arith.constant 0 : i32
    %c0_i32_0 = arith.constant 0 : i32
    %c0_i32_1 = arith.constant 0 : i32
    return %c0_i32, %c0_i32_0 : i32, i32
  }
  func.func @transform_10(%arg0: i32) -> (i32, i32) {
    %c0_i32 = arith.constant 0 : i32
    %c0_i32_0 = arith.constant 0 : i32
    %c0_i32_1 = arith.constant 0 : i32
    return %c0_i32, %c0_i32_0 : i32, i32
  }
  func.func @transform_11(%arg0: i32) -> (i32, i32, i32) {
    %c0_i32 = arith.constant 0 : i32
    %c0_i32_0 = arith.constant 0 : i32
    %c0_i32_1 = arith.constant 0 : i32
    return %arg0, %c0_i32, %c0_i32_0 : i32, i32, i32
  }
}

</mosaic_0001>

<bundles_post_ra>
// kernel: tpu_custom_call.1
= control target key start
LH: loop header
LB: loop body
LE: loop exit
PB: predicated region body
PF: predicated region fallthrough
CT: control target
= control target key end

     0   :  { %s2894_s0 = inlined_call_operand.vmem [shape: f32[2,8,32], index: 0, kind: input, shape index: {}]   ;;  %s2895_s1 = inlined_call_operand.vmem [shape: f32[1,32], index: 1, kind: input, shape index: {}]   ;;  %s2896_s2 = inlined_call_operand.vmem [shape: f32[1,32], index: 2, kind: input, shape index: {}]   ;;  %s2897_s3 = inlined_call_operand.vmem [shape: f32[4,32,24], index: 3, kind: input, shape index: {}]   ;;  %s2898_s4 = inlined_call_operand.vmem [shape: f32[4,8,32], index: 4, kind: input, shape index: {}]   ;;  %s2899_s5 = inlined_call_operand.vmem [shape: f32[1,32], index: 5, kind: input, shape index: {}]   ;;  %s2900_s6 = inlined_call_operand.vmem [shape: f32[1,32], index: 6, kind: input, shape index: {}]   ;;  %s2901_s7 = inlined_call_operand.vmem [shape: f32[96,64], index: 7, kind: input, shape index: {}]   ;;  %s2902_s8 = inlined_call_operand.vmem [shape: f32[1,64], index: 8, kind: input, shape index: {}]   ;;  %s2903_s9 = inlined_call_operand.vmem [shape: f32[192,32], index: 9, kind: input, shape index: {}]   ;;  %s2904_s10 = inlined_call_operand.vmem [shape: f32[1,32], index: 10, kind: input, shape index: {}]   ;;  %s2905_s11 = inlined_call_operand.hbm [shape: f32[2,8,32], index: 11, kind: output, shape index: {}]  }
   0x1   :  { %2906 = sst [smem:[#allocation5_spill]] %s2894_s0 }
   0x2   :  { %2907 = sst [smem:[#allocation6_spill]] %s2895_s1 }
   0x3   :  { %16 = vsyncpa [#allocation3], 0 }
   0x4   :  { %18 = vsyncpa [#allocation3 + $0x1], 0  ;;  %s2444_s17 = smov 0   ;;  %s2446_s18 = smov 0  }
   0x5   :  { %s2448_s19 = smov 0   ;;  %s2450_s20 = smov 0  }
   0x6 LB: > { %s2465_s21 = sadd.s32 4294967295, %s2375_s20   ;;  %s2020_s22 = sadd.s32 4294967294, %s2375_s20   ;;  %s2375_s20 = sphi %s2450_s20, %s2915_s20   ;;  %s2371_s19 = sphi %s2448_s19, %s2914_s19   ;;  %s2367_s18 = sphi %s2446_s18, %s2913_s18   ;;  %s2363_s17 = sphi %s2444_s17, %s2912_s17  }
   0x7   : > { %s2469_s23 = sadd.s32 1, %s2375_s20   ;;  %s267_s24 = sadd.s32 1, %s2371_s19 }
   0x8   : > { %s264_s25 = ssub.s32 %s2375_s20, %s2469_s23  ;;  %p277_p0 = scmp.ne.s32.totalorder %s2371_s19, %s2367_s18 }
   0x9   : > { %p265_p1 = scmp.eq.s32.totalorder %s264_s25, 0  ;;  %p278_p2 = scmp.eq.s32.totalorder %s2465_s21, 1 }
   0xa   : > { %p283_p3 = scmp.ne.s32.totalorder %s2367_s18, %s2363_s17  ;;  %p284_p4 = scmp.eq.s32.totalorder %s2020_s22, 1 }
   0xb   : > { %s2480_s26 = scalar_select %p265_p1, %s2371_s19, %s267_s24  }
   0xc   : > { %p2482_p5 = por %p278_p2, %p277_p0  ;;  %p2486_p6 = por %p284_p4, %p283_p3 }
   0xd   : > { %p2023_p7 = scmp.ge.s32.totalorder %s2375_s20, 1  ;;  %p339_p8 = scmp.lt.s32.totalorder %s2375_s20, 3 }
   0xf   : > { %p340_p9 = pnand %p2023_p7, %p339_p8 }
  0x10   : > { %p378_p10 = scmp.lt.s32.totalorder (!%p340_p9), %s2465_s21, 1  ;;  %s2910_s0 = sld [smem:[#allocation5_spill]] (!%p340_p9) }
  0x11   : > { %343 = sbr.rel (%p340_p9) target bundleno = 2554 (0x9fa), region = 64  ;;  %s2911_s1 = sld [smem:[#allocation6_spill]] (!%p340_p9) }
  0x12   : > { %s2380_s12 = smov (!%p340_p9), 112   ;;  %s2381_s25 = smov (!%p340_p9), 32  }
  0x13   : > { %s375_s16 = sand.u32 (!%p340_p9), 1, %s2367_s18  }
  0x14   : > { %s2024_s22 = sshll.u32 (!%p340_p9), %s375_s16, 3 }
  0x16   : > { %s379_s29 = scalar_select %p378_p10, %s2465_s21, 1  ;;  %vm385_vm0 = vcmask 261120   ;;  %v425_v7 = vld [vmem:[%s2897_s3 + $0x18] sm:$0xff]  ;;  %v2377_v9 = vmov 0.0   ;;  %v424_v10 = vld [vmem:[%s2897_s3 + $0x10] sm:$0xff]  ;;  %v423_v12 = vld [vmem:[%s2897_s3 + $0x8] sm:$0xff] }
  0x17   : > { %v437_v8 = vld [vmem:[%s2897_s3 + $0x78] sm:$0xff]  ;;  %2115 = vmatprep.subr.mxu0 %v2377_v9  ;;  %2148 = vmatprep.subr.mxu1 %v2377_v9  ;;  %v436_v11 = vld [vmem:[%s2897_s3 + $0x70] sm:$0xff]  ;;  %v435_v13 = vld [vmem:[%s2897_s3 + $0x68] sm:$0xff]  ;;  %vm2378_vm1 = vmmov 0   ;;  %vm724_vm4 = vcmask 64512   ;;  %vm1735_vm9 = vcmask 523264  }
  0x18   : > { %s2025_s30 = sshll.u32 %s379_s29, 3  ;;  %2116 = vmatpush3.msra.mxu0 %v425_v7  ;;  %2149 = vmatpush3.msra.mxu1 %v437_v8  ;;  %v422_v14 = vld [vmem:[%s2897_s3] sm:$0xff]  ;;  %v429_v30 = vld [vmem:[%s2897_s3 + $0x38] sm:$0xff]  ;;  %v428_v31 = vld [vmem:[%s2897_s3 + $0x30] sm:$0xff]  ;;  %s2382_s29 = smov 64   ;;  %vm1756_vm10 = vcmask 785408  }
  0x19   : > { %s381_s14 = scalar_lea.vmem %s2910_s0, %s2025_s30  ;;  %2117 = vmatprep.subr.mxu0 %v2377_v9  ;;  %2150 = vmatprep.subr.mxu1 %v2377_v9  ;;  %v434_v15 = vld [vmem:[%s2897_s3 + $0x60] sm:$0xff]  ;;  %v427_v32 = vld [vmem:[%s2897_s3 + $0x28] sm:$0xff]  ;;  %v433_v34 = vld [vmem:[%s2897_s3 + $0x58] sm:$0xff]  ;;  %s2379_s30 = smov 120  }
  0x1a   : > { %v2497_v0 = vld [vmem:[%s381_s14] sm:$0xff]  ;;  %2118 = vmatpush3.msra.mxu0 %v424_v10  ;;  %2151 = vmatpush3.msra.mxu1 %v436_v11  ;;  %v432_v35 = vld [vmem:[%s2897_s3 + $0x50] sm:$0xff]  ;;  %v431_v36 = vld [vmem:[%s2897_s3 + $0x48] sm:$0xff]  ;;  %s1948_s0 = scalar_lea.sflag [#allocation3], %s375_s16 }
  0x1b   : > { %v386_v1 = vsel %vm385_vm0, %v2497_v0, 0.0  ;;  %2119 = vmatprep.subr.mxu0 %v2377_v9  ;;  %2152 = vmatprep.subr.mxu1 %v2377_v9  ;;  %v2026_v24 = vld [vmem:[%s2911_s1] ss:$0 sm:$0xff] }
  0x1c   : > { %387 = vadd.xlane.f32.xlu0 %v386_v1  ;;  %2120 = vmatpush3.msra.mxu0 %v423_v12  ;;  %v2027_v27 = vld [vmem:[%s2896_s2] ss:$0 sm:$0xff] }
  0x1d   : > { %2153 = vmatpush3.msra.mxu1 %v435_v13  ;;  %2121 = vmatprep.subr.mxu0 %v2377_v9  ;;  %v426_v33 = vld [vmem:[%s2897_s3 + $0x20] sm:$0xff] }
  0x1e   : > { %2154 = vmatprep.subr.mxu1 %v2377_v9  ;;  %2122 = vmatpush3.msra.mxu0 %v422_v14  ;;  %v430_v37 = vld [vmem:[%s2897_s3 + $0x40] sm:$0xff] }
  0x1f   : > { %2123 = vmatprep.mubr.msk.f32.mxu0 %vm2378_vm1, %v2377_v9  ;;  %2126 = vmatprep.subr.mxu0 %v2377_v9 }
  0x20   : > { %2155 = vmatpush3.msra.mxu1 %v434_v15  ;;  %2156 = vmatprep.mubr.msk.f32.mxu1 %vm2378_vm1, %v2377_v9 }
  0x21   : > { %2174 = vmatprep.subr.mxu1 %v2377_v9 }
  0xa5   : > { %v388_v2 = vpop.xlane.xlu0 %387 }
  0xa6   : > { %v390_v3 = vmul.f32 0.03125, %v388_v2 }
  0xa8   : > { %v391_v4 = vsub.f32 %v2497_v0, %v390_v3 }
  0xaa   : > { %v392_v5 = vmul.f32 %v391_v4, %v391_v4  ;;  %v404_v25 = vmul.f32 %v2026_v24, %v391_v4 }
  0xac   : > { %v393_v6 = vsel %vm385_vm0, %v392_v5, 0.0 }
  0xad   : > { %394 = vadd.xlane.f32.xlu0 %v393_v6 }
 0x136   : > { %v395_v16 = vpop.xlane.xlu0 %394 }
 0x137   : > { %v397_v17 = vmul.f32 0.032258064, %v395_v16 }
 0x139   : > { %2291 = vrsqrt.f32 %v397_v17  ;;  %vm407_vm2 = vcmp.eq.f32.partialorder %v397_v17, inf  ;;  %v410_v20 = vand.u32 2147483648, %v397_v17  ;;  %vm409_vm3 = vcmp.eq.f32.partialorder %v397_v17, 0.0 }
 0x146   : > { %v2292_v18 = vpop.eup %2291 }
 0x147   : > { %v406_v19 = vmul.f32 %v2292_v18, %v397_v17 }
 0x149   : > { %v408_v21 = vsel %vm407_vm2, %v397_v17, %v406_v19 }
 0x14a   : > { %v411_v22 = vsel %vm409_vm3, %v410_v20, %v408_v21 }
 0x14b   : > { %v412_v23 = vadd.f32 1e-06, %v411_v22 }
 0x14d   : > { %2293 = vrcp.f32 %v412_v23 }
 0x15a   : > { %v2294_v26 = vpop.eup %2293 }
 0x15b   : > { %v414_v28 = vmul.f32 %v2294_v26, %v404_v25 }
 0x15d   : > { %v421_v29 = vadd.f32 %v2027_v27, %v414_v28 }
 0x15f   : > { %2124 = vmatmul.mubr.msk.f32.vlgmr.msra.gmra.mxu0 %vm385_vm0, %v421_v29  ;;  %2157 = vmatmul.mubr.msk.f32.vlgmr.msra.gmra.mxu1 %vm385_vm0, %v421_v29 }
 0x160   : > { %2127 = vmatpush3.msra.mxu0 %v429_v30  ;;  %2134 = vmatprep.mubr.msk.f32.mxu0 %vm2378_vm1, %v2377_v9 }
 0x161   : > { %2128 = vmatprep.subr.mxu0 %v2377_v9  ;;  %2176 = vmatprep.mubr.msk.f32.mxu1 %vm2378_vm1, %v2377_v9 }
 0x162   : > { %2129 = vmatpush3.msra.mxu0 %v428_v31 }
 0x163   : > { %2130 = vmatprep.subr.mxu0 %v2377_v9 }
 0x164   : > { %2131 = vmatpush3.msra.mxu0 %v427_v32 }
 0x165   : > { %2132 = vmatprep.subr.mxu0 %v2377_v9 }
 0x166   : > { %2133 = vmatpush3.msra.mxu0 %v426_v33 }
 0x167   : > { %2135 = vmatmul.mubr.msk.f32.vlgmr.msra.gmra.mxu0 %vm385_vm0, %v421_v29  ;;  %2137 = vmatprep.subr.mxu0 %v2377_v9 }
 0x168   : > { %2138 = vmatpush3.msra.mxu0 %v433_v34  ;;  %2145 = vmatprep.mubr.msk.f32.mxu0 %vm2378_vm1, %v2377_v9 }
 0x169   : > { %2139 = vmatprep.subr.mxu0 %v2377_v9 }
 0x16a   : > { %2140 = vmatpush3.msra.mxu0 %v432_v35 }
 0x16b   : > { %2141 = vmatprep.subr.mxu0 %v2377_v9 }
 0x16c   : > { %2142 = vmatpush3.msra.mxu0 %v431_v36  ;;  %v1378_v36 = vld [vmem:[%s2898_s4] sm:$0xff] }
 0x16d   : > { %2143 = vmatprep.subr.mxu0 %v2377_v9 }
 0x16e   : > { %2144 = vmatpush3.msra.mxu0 %v430_v37  ;;  %v1379_v37 = vld [vmem:[%s2898_s4 + $0x8] sm:$0xff] }
 0x16f   : > { %2146 = vmatmul.mubr.msk.f32.vlgmr.msra.gmra.mxu0 %vm385_vm0, %v421_v29  ;;  %2159 = vmatprep.subr.mxu0 %v2377_v9 }
 0x170   : > { %2161 = vmatprep.mubr.msk.f32.mxu0 %vm2378_vm1, %v2377_v9 }
 0x21f   : > { %v507_v38 = vpop.f32.mrf.mxu0  ;;  %v2591_v39 = vpop.f32.mrf.mxu1 }
 0x220   : > { %722 = vrot.lane.b32.xlu1 %v507_v38, %s2379_s30 }
 0x221   : > { %v2125_v40 = vpop.f32.mrf.mxu0  ;;  %v2158_v41 = vpop.f32.mrf.mxu1 }
 0x227   : > { %v577_v42 = vpop.f32.mrf.mxu0 }
 0x228   : > { %800 = vrot.lane.b32.xlu1 %v577_v42, %s2379_s30 }
 0x229   : > { %v2136_v43 = vpop.f32.mrf.mxu0 }
 0x22a   : > { %v1381_v43 = vld [vmem:[%s2898_s4 + $0x18] sm:$0xff] }
 0x22c   : > { %954 = vrot.lane.b32.xlu1 %v2591_v39, %s2379_s30 }
 0x22f   : > { %v2594_v44 = vpop.f32.mrf.mxu0 }
 0x230   : > { %877 = vrot.lane.b32.xlu0 %v2594_v44, %s2379_s30  ;;  %s377_s30 = scalar_lea.vmem [#allocation2], %s2024_s22 }
 0x231   : > { %v2147_v45 = vpop.f32.mrf.mxu0 }
 0x292   : > { %v723_v46 = vpop.permute.xlu1 %722 }
 0x293   : > { %2160 = vmatpush3.xpose.msk.msra.mxu0 %vm724_vm4, %v723_v46 }
 0x294   : > { %2164 = vmatprep.subr.mxu0 %v2377_v9 }
 0x296   : > { %2162 = vmatmul.mubr.msk.f32.vlgmr.msra.gmra.mxu0 %vm724_vm4, %v507_v38 }
 0x297   : > { %2166 = vmatprep.mubr.msk.f32.mxu0 %vm2378_vm1, %v2377_v9 }
 0x29a   : > { %v801_v47 = vpop.permute.xlu1 %800 }
 0x29b   : > { %2165 = vmatpush3.xpose.msk.msra.mxu0 %vm724_vm4, %v801_v47 }
 0x29c   : > { %2169 = vmatprep.subr.mxu0 %v2377_v9 }
 0x29e   : > { %2167 = vmatmul.mubr.msk.f32.vlgmr.msra.gmra.mxu0 %vm724_vm4, %v577_v42  ;;  %v955_v48 = vpop.permute.xlu1 %954 }
 0x29f   : > { %2175 = vmatpush3.xpose.msk.msra.mxu1 %vm724_vm4, %v955_v48  ;;  %2171 = vmatprep.mubr.msk.f32.mxu0 %vm2378_vm1, %v2377_v9 }
 0x2a0   : > { %2184 = vmatprep.subr.mxu1 %v2377_v9 }
 0x2a2   : > { %2177 = vmatmul.mubr.msk.f32.vlgmr.msra.gmra.mxu1 %vm724_vm4, %v2591_v39  ;;  %v878_v49 = vpop.permute.xlu0 %877 }
 0x2a3   : > { %2170 = vmatpush3.xpose.msk.msra.mxu0 %vm724_vm4, %v878_v49  ;;  %2186 = vmatprep.mubr.msk.f32.mxu1 %vm2378_vm1, %v2377_v9 }
 0x2a4   : > { %2179 = vmatprep.subr.mxu0 %v2377_v9 }
 0x2a6   : > { %2172 = vmatmul.mubr.msk.f32.vlgmr.msra.gmra.mxu0 %vm724_vm4, %v2594_v44 }
 0x2a7   : > { %2181 = vmatprep.mubr.msk.f32.mxu0 %vm2378_vm1, %v2377_v9 }
 0x356   : > { %v795_v50 = vpop.f32.mrf.mxu0 }
 0x357   : > { %v1030_v51 = vsel %vm724_vm4, %v795_v50, -inf }
 0x358   : > { %1031 = vmax.xlane.f32.xlu1 %v1030_v51  ;;  %v2163_v52 = vpop.f32.mrf.mxu0 }
 0x35e   : > { %v872_v53 = vpop.f32.mrf.mxu0 }
 0x35f   : > { %v1033_v54 = vsel %vm724_vm4, %v872_v53, -inf }
 0x360   : > { %1034 = vmax.xlane.f32.xlu0 %v1033_v54  ;;  %v2168_v55 = vpop.f32.mrf.mxu0 }
 0x362   : > { %v1026_v56 = vpop.f32.mrf.mxu1 }
 0x363   : > { %v1039_v61 = vsel %vm724_vm4, %v1026_v56, -inf }
 0x364   : > { %v2178_v57 = vpop.f32.mrf.mxu1 }
 0x366   : > { %v949_v58 = vpop.f32.mrf.mxu0 }
 0x367   : > { %v1036_v59 = vsel %vm724_vm4, %v949_v58, -inf }
 0x368   : > { %1037 = vmax.xlane.f32.xlu1 %v1036_v59  ;;  %v2173_v60 = vpop.f32.mrf.mxu0 }
 0x36c   : > { %1040 = vmax.xlane.f32.xlu1 %v1039_v61 }
 0x376   : > { %1074 = vrot.lane.b32.xlu0 %v507_v38, %s2380_s12  ;;  %v1380_v38 = vld [vmem:[%s2898_s4 + $0x10] sm:$0xff] }
 0x37d   : > { %1150 = vrot.lane.b32.xlu1 %v577_v42, %s2380_s12 }
 0x3e1   : > { %v1032_v62 = vpop.xlane.xlu1 %1031 }
 0x3e2   : > { %v1042_v63 = vsub.f32 %v795_v50, %v1032_v62 }
 0x3e4   : > { %v1046_v1 = vmul.f32 1.442695, %v1042_v63 }
 0x3e6   : > { %2295 = vpow2.f32 %v1046_v1 }
 0x3e9   : > { %v1035_v2 = vpop.xlane.xlu0 %1034 }
 0x3ea   : > { %v1043_v7 = vsub.f32 %v872_v53, %v1035_v2 }
 0x3ec   : > { %v1048_v13 = vmul.f32 1.442695, %v1043_v7  ;;  %v1748_v7 = vld [vmem:[%s2901_s7 + $0x58] sm:$0xff] }
 0x3ed   : > { %v1075_v3 = vpop.permute.xlu0 %1074 }
 0x3ee   : > { %2180 = vmatpush3.msra.mxu0 %v1075_v3 }
 0x3ef   : > { %2189 = vmatprep.subr.mxu0 %v2377_v9 }
 0x3f1   : > { %v1038_v4 = vpop.xlane.xlu1 %1037 }
 0x3f2   : > { %v1044_v5 = vsub.f32 %v949_v58, %v1038_v4 }
 0x3f3   : > { %v2296_v6 = vpop.eup %2295 }
 0x3f4   : > { %v1050_v8 = vmul.f32 1.442695, %v1044_v5  ;;  %v1054_v10 = vsel %vm724_vm4, %v2296_v6, 0.0 }
 0x3f5   : > { %v1041_v11 = vpop.xlane.xlu1 %1040  ;;  %1055 = vadd.xlane.f32.xlu1 %v1054_v10  ;;  %v1745_v10 = vld [vmem:[%s2901_s7 + $0x40] sm:$0xff] }
 0x3f6   : > { %2297 = vpow2.f32 %v1050_v8  ;;  %v1045_v12 = vsub.f32 %v1026_v56, %v1041_v11  ;;  %v1746_v8 = vld [vmem:[%s2901_s7 + $0x48] sm:$0xff]  ;;  %v1744_v11 = vld [vmem:[%s2901_s7 + $0x38] sm:$0xff] }
 0x3f8   : > { %v1052_v14 = vmul.f32 1.442695, %v1045_v12  ;;  %v1743_v12 = vld [vmem:[%s2901_s7 + $0x30] sm:$0xff] }
 0x3f9   : > { %v1151_v15 = vpop.permute.xlu1 %1150 }
 0x3fa   : > { %2299 = vpow2.f32 %v1052_v14  ;;  %2185 = vmatpush3.msra.mxu1 %v1151_v15  ;;  %v1741_v14 = vld [vmem:[%s2901_s7 + $0x20] sm:$0xff]  ;;  %v1740_v15 = vld [vmem:[%s2901_s7 + $0x18] sm:$0xff] }
 0x3fb   : > { %2194 = vmatprep.subr.mxu1 %v2377_v9  ;;  %2301 = vpow2.f32 %v1048_v13  ;;  %v1742_v13 = vld [vmem:[%s2901_s7 + $0x28] sm:$0xff] }
 0x403   : > { %v2298_v16 = vpop.eup %2297 }
 0x404   : > { %v1060_v17 = vsel %vm724_vm4, %v2298_v16, 0.0 }
 0x405   : > { %1061 = vadd.xlane.f32.xlu0 %v1060_v17 }
 0x407   : > { %v2300_v18 = vpop.eup %2299 }
 0x408   : > { %v1063_v19 = vsel %vm724_vm4, %v2300_v18, 0.0  ;;  %v2302_v20 = vpop.eup %2301 }
 0x409   : > { %1064 = vadd.xlane.f32.xlu1 %v1063_v19  ;;  %v1057_v21 = vsel %vm724_vm4, %v2302_v20, 0.0 }
 0x40d   : > { %1058 = vadd.xlane.f32.xlu1 %v1057_v21 }
 0x41b   : > { %1302 = vrot.lane.b32.xlu0 %v2591_v39, %s2380_s12 }
 0x41e   : > { %1226 = vrot.lane.b32.xlu1 %v2594_v44, %s2380_s12  ;;  %s1961_s12 = sshll.u32 %s377_s30, 4  ;;  %s1962_s12 = int_to_ptr.vmem [resolvable:$true] %s1961_s12 }
 0x41f   : > { %s2315_s24 = scalar_lea.vmem %s1962_s12, 128 }
 0x420   : > { %p2316_p11 = scmp.ne.s32.totalorder %s1962_s12, %s2315_s24 }
 0x422   : > { %p2317_p12 = pnand %p2316_p11, %p2482_p5 }
 0x424   : > { %p2318_p13 = pneg %p2317_p12 }
 0x47e   : > { %v1056_v22 = vpop.xlane.xlu1 %1055 }
 0x47f   : > { %2303 = vrcp.f32 %v1056_v22 }
 0x48c   : > { %v2304_v23 = vpop.eup %2303 }
 0x48d   : > { %v1067_v24 = vmul.f32 %v2304_v23, %v2296_v6 }
 0x48e   : > { %v1062_v25 = vpop.xlane.xlu0 %1061 }
 0x48f   : > { %2305 = vrcp.f32 %v1062_v25  ;;  %2182 = vmatmul.mubr.msk.f32.vlgmr.msra.gmra.mxu0 %vm724_vm4, %v1067_v24  ;;  %v1738_v25 = vld [vmem:[%s2901_s7 + $0x8] sm:$0xff] }
 0x490   : > { %2191 = vmatprep.mubr.msk.f32.mxu0 %vm2378_vm1, %v2377_v9 }
 0x492   : > { %v1065_v26 = vpop.xlane.xlu1 %1064  ;;  %v1303_v34 = vpop.permute.xlu0 %1302 }
 0x496   : > { %v1059_v27 = vpop.xlane.xlu1 %1058 }
 0x497   : > { %2307 = vrcp.f32 %v1059_v27  ;;  %v2048_v27 = vld [vmem:[%s2899_s5] ss:$0 sm:$0xff] }
 0x498   : > { %2309 = vrcp.f32 %v1065_v26  ;;  %v1737_v26 = vld [vmem:[%s2901_s7] sm:$0xff] }
 0x49a   : > { %v1227_v28 = vpop.permute.xlu1 %1226 }
 0x49b   : > { %2190 = vmatpush3.msra.mxu0 %v1227_v28  ;;  %v1718_v28 = vlaneseq }
 0x49c   : > { %v2306_v29 = vpop.eup %2305  ;;  %2199 = vmatprep.subr.mxu0 %v2377_v9 }
 0x49d   : > { %v1071_v30 = vmul.f32 %v2306_v29, %v2298_v16  ;;  %v1739_v16 = vld [vmem:[%s2901_s7 + $0x10] sm:$0xff] }
 0x49f   : > { %2192 = vmatmul.mubr.msk.f32.vlgmr.msra.gmra.mxu0 %vm724_vm4, %v1071_v30 }
 0x4a0   : > { %2201 = vmatprep.mubr.msk.f32.mxu0 %vm2378_vm1, %v2377_v9  ;;  %2200 = vmatpush3.msra.mxu0 %v1378_v36 }
 0x4a1   : > { %2209 = vmatprep.subr.mxu0 %v2377_v9 }
 0x4a4   : > { %v2308_v31 = vpop.eup %2307 }
 0x4a5   : > { %v1069_v32 = vmul.f32 %v2308_v31, %v2302_v20  ;;  %v2310_v33 = vpop.eup %2309  ;;  %v2049_v31 = vld [vmem:[%s2900_s6] ss:$0 sm:$0xff] }
 0x4a6   : > { %v1073_v35 = vmul.f32 %v2310_v33, %v2300_v18 }
 0x4a7   : > { %2187 = vmatmul.mubr.msk.f32.vlgmr.msra.gmra.mxu1 %vm724_vm4, %v1069_v32  ;;  %v2739_v32 = vshrl.u32 %v1718_v28, 7 }
 0x4a8   : > { %2195 = vmatpush3.msra.mxu1 %v1303_v34  ;;  %2196 = vmatprep.mubr.msk.f32.mxu1 %vm2378_vm1, %v2377_v9 }
 0x4a9   : > { %2204 = vmatprep.subr.mxu1 %v2377_v9  ;;  %vm1723_vm7 = vcmp.eq.s32.totalorder %v2739_v32, 7  ;;  %vm1720_vm8 = vcmp.eq.s32.totalorder %v2739_v32, 0 }
 0x4ab   : > { %2197 = vmatmul.mubr.msk.f32.vlgmr.msra.gmra.mxu1 %vm724_vm4, %v1073_v35 }
 0x4ac   : > { %2206 = vmatprep.mubr.msk.f32.mxu1 %vm2378_vm1, %v2377_v9  ;;  %2205 = vmatpush3.msra.mxu1 %v1379_v37 }
 0x4ad   : > { %2214 = vmatprep.subr.mxu1 %v2377_v9 }
 0x54f   : > { %v1146_v39 = vpop.f32.mrf.mxu0 }
 0x550   : > { %2202 = vmatmul.mubr.msk.f32.vlgmr.msra.gmra.mxu0 %vm724_vm4, %v1146_v39 }
 0x551   : > { %v2183_v40 = vpop.f32.mrf.mxu0  ;;  %2210 = vmatpush3.msra.mxu0 %v1380_v38  ;;  %2211 = vmatprep.mubr.msk.f32.mxu0 %vm2378_vm1, %v2377_v9 }
 0x552   : > { %2219 = vmatprep.subr.mxu0 %v2377_v9 }
 0x55f   : > { %v1298_v41 = vpop.f32.mrf.mxu0 }
 0x560   : > { %2212 = vmatmul.mubr.msk.f32.vlgmr.msra.gmra.mxu0 %vm724_vm4, %v1298_v41 }
 0x561   : > { %v2193_v42 = vpop.f32.mrf.mxu0  ;;  %2243 = vmatprep.mubr.msk.f32.mxu0 %vm2378_vm1, %v2377_v9  ;;  %2220 = vmatpush3.msra.mxu0 %v1748_v7 }
 0x562   : > { %2221 = vmatprep.subr.mxu0 %v2377_v9 }
 0x567   : > { %v1222_v44 = vpop.f32.mrf.mxu1 }
 0x568   : > { %2207 = vmatmul.mubr.msk.f32.vlgmr.msra.gmra.mxu1 %vm724_vm4, %v1222_v44  ;;  %v1854_v44 = vld [vmem:[%s2903_s9 + $0x70] sm:$0xff] }
 0x569   : > { %v2188_v45 = vpop.f32.mrf.mxu1  ;;  %2215 = vmatpush3.msra.mxu1 %v1381_v43  ;;  %2216 = vmatprep.mubr.msk.f32.mxu1 %vm2378_vm1, %v2377_v9  ;;  %v1855_v43 = vld [vmem:[%s2903_s9 + $0x78] sm:$0xff] }
 0x56a   : > { %1874 = vmatprep.subr.mxu1 %v2377_v9  ;;  %v1853_v45 = vld [vmem:[%s2903_s9 + $0x68] sm:$0xff] }
 0x56b   : > { %v1374_v46 = vpop.f32.mrf.mxu1 }
 0x56c   : > { %2217 = vmatmul.mubr.msk.f32.vlgmr.msra.gmra.mxu1 %vm724_vm4, %v1374_v46  ;;  %v1852_v46 = vld [vmem:[%s2903_s9 + $0x60] sm:$0xff] }
 0x56d   : > { %v2198_v47 = vpop.f32.mrf.mxu1  ;;  %1875 = vmatpush1.msra.mxu1 %v1855_v43 }
 0x56e   : > { %1876 = vmatprep.subr.mxu1 %v2377_v9  ;;  %v1851_v47 = vld [vmem:[%s2903_s9 + $0x58] sm:$0xff] }
 0x56f   : > { %1877 = vmatpush1.msra.mxu1 %v1854_v44 }
 0x570   : > { %1878 = vmatprep.subr.mxu1 %v2377_v9 }
 0x571   : > { %1879 = vmatpush1.msra.mxu1 %v1853_v45 }
 0x572   : > { %1880 = vmatprep.subr.mxu1 %v2377_v9 }
 0x573   : > { %1881 = vmatpush1.msra.mxu1 %v1852_v46 }
 0x574   : > { %1882 = vmatprep.subr.mxu1 %v2377_v9 }
 0x575   : > { %1883 = vmatpush1.msra.mxu1 %v1851_v47 }
 0x576   : > { %1884 = vmatprep.subr.mxu1 %v2377_v9 }
 0x610   : > { %v1451_v48 = vpop.f32.mrf.mxu0 }
 0x611   : > { %v1674_v53 = vsel %vm385_vm0, %v1451_v48, 0.0  ;;  %v1850_v48 = vld [vmem:[%s2903_s9 + $0x50] sm:$0xff] }
 0x612   : > { %v2203_v49 = vpop.f32.mrf.mxu0  ;;  %1885 = vmatpush1.msra.mxu1 %v1850_v48 }
 0x613   : > { %v1849_v49 = vld [vmem:[%s2903_s9 + $0x48] sm:$0xff]  ;;  %1886 = vmatprep.subr.mxu1 %v2377_v9 }
 0x614   : > { %1887 = vmatpush1.msra.mxu1 %v1849_v49 }
 0x615   : > { %1888 = vmatprep.subr.mxu1 %v2377_v9 }
 0x620   : > { %v1597_v50 = vpop.f32.mrf.mxu0 }
 0x621   : > { %v1677_v57 = vsel %vm385_vm0, %v1597_v50, 0.0  ;;  %v1848_v50 = vld [vmem:[%s2903_s9 + $0x40] sm:$0xff] }
 0x622   : > { %v2213_v51 = vpop.f32.mrf.mxu0  ;;  %1889 = vmatpush1.msra.mxu1 %v1848_v50 }
 0x623   : > { %v1847_v51 = vld [vmem:[%s2903_s9 + $0x38] sm:$0xff]  ;;  %1890 = vmatprep.subr.mxu1 %v2377_v9 }
 0x624   : > { %1891 = vmatpush1.msra.mxu1 %v1847_v51 }
 0x625   : > { %1892 = vmatprep.subr.mxu1 %v2377_v9 }
 0x628   : > { %v1524_v52 = vpop.f32.mrf.mxu1 }
 0x629   : > { %v1675_v54 = vsel %vm385_vm0, %v1524_v52, 0.0  ;;  %v1846_v52 = vld [vmem:[%s2903_s9 + $0x30] sm:$0xff] }
 0x62a   : > { %v1676_v55 = vadd.f32 %v1675_v54, %v1674_v53  ;;  %v2208_v56 = vpop.f32.mrf.mxu1  ;;  %v1845_v53 = vld [vmem:[%s2903_s9 + $0x28] sm:$0xff]  ;;  %1893 = vmatpush1.msra.mxu1 %v1846_v52  ;;  %v1844_v54 = vld [vmem:[%s2903_s9 + $0x20] sm:$0xff] }
 0x62b   : > { %1894 = vmatprep.subr.mxu1 %v2377_v9  ;;  %v1842_v56 = vld [vmem:[%s2903_s9 + $0x10] sm:$0xff] }
 0x62c   : > { %v1670_v58 = vpop.f32.mrf.mxu1  ;;  %v1678_v59 = vadd.f32 %v1677_v57, %v1676_v55  ;;  %1895 = vmatpush1.msra.mxu1 %v1845_v53  ;;  %v1843_v55 = vld [vmem:[%s2903_s9 + $0x18] sm:$0xff]  ;;  %v1841_v57 = vld [vmem:[%s2903_s9 + $0x8] sm:$0xff] }
 0x62d   : > { %v1679_v60 = vsel %vm385_vm0, %v1670_v58, 0.0  ;;  %1896 = vmatprep.subr.mxu1 %v2377_v9  ;;  %v1840_v58 = vld [vmem:[%s2903_s9] sm:$0xff] }
 0x62e   : > { %v1680_v61 = vadd.f32 %v1679_v60, %v1678_v59  ;;  %v2218_v62 = vpop.f32.mrf.mxu1  ;;  %1897 = vmatpush1.msra.mxu1 %v1844_v54  ;;  %v1863_v59 = vld [vmem:[%s2903_s9 + $0xb8] sm:$0xff]  ;;  %v1862_v60 = vld [vmem:[%s2903_s9 + $0xb0] sm:$0xff] }
 0x62f   : > { %1898 = vmatprep.subr.mxu1 %v2377_v9  ;;  %v1860_v62 = vld [vmem:[%s2903_s9 + $0xa0] sm:$0xff] }
 0x630   : > { %v2680_v63 = vadd.f32 %v1680_v61, %v2497_v0  ;;  %v1747_v0 = vld [vmem:[%s2901_s7 + $0x50] sm:$0xff]  ;;  %1899 = vmatpush1.msra.mxu1 %v1843_v55  ;;  %v1861_v61 = vld [vmem:[%s2903_s9 + $0xa8] sm:$0xff] }
 0x631   : > { %2222 = vmatpush3.msra.mxu0 %v1747_v0  ;;  %1900 = vmatprep.subr.mxu1 %v2377_v9 }
 0x632   : > { %v1684_v1 = vsel %vm385_vm0, %v2680_v63, 0.0  ;;  %2223 = vmatprep.subr.mxu0 %v2377_v9  ;;  %1901 = vmatpush1.msra.mxu1 %v1842_v56 }
 0x633   : > { %1685 = vadd.xlane.f32.xlu1 %v1684_v1  ;;  %2224 = vmatpush3.msra.mxu0 %v1746_v8  ;;  %v1859_v1 = vld [vmem:[%s2903_s9 + $0x98] sm:$0xff] }
 0x634   : > { %2225 = vmatprep.subr.mxu0 %v2377_v9  ;;  %1902 = vmatprep.subr.mxu1 %v2377_v9 }
 0x635   : > { %2226 = vmatpush3.msra.mxu0 %v1745_v10  ;;  %1903 = vmatpush1.msra.mxu1 %v1841_v57 }
 0x636   : > { %2227 = vmatprep.subr.mxu0 %v2377_v9  ;;  %1904 = vmatprep.subr.mxu1 %v2377_v9 }
 0x637   : > { %2228 = vmatpush3.msra.mxu0 %v1744_v11  ;;  %1905 = vmatpush1.msra.mxu1 %v1840_v58 }
 0x638   : > { %2229 = vmatprep.subr.mxu0 %v2377_v9  ;;  %1922 = vmatprep.subr.mxu1 %v2377_v9 }
 0x639   : > { %2230 = vmatpush3.msra.mxu0 %v1743_v12  ;;  %1923 = vmatpush2.msra.mxu1 %v1863_v59 }
 0x63a   : > { %2231 = vmatprep.subr.mxu0 %v2377_v9  ;;  %1924 = vmatprep.subr.mxu1 %v2377_v9 }
 0x63b   : > { %2232 = vmatpush3.msra.mxu0 %v1742_v13  ;;  %1925 = vmatpush2.msra.mxu1 %v1862_v60 }
 0x63c   : > { %2233 = vmatprep.subr.mxu0 %v2377_v9  ;;  %1926 = vmatprep.subr.mxu1 %v2377_v9 }
 0x63d   : > { %2234 = vmatpush3.msra.mxu0 %v1741_v14  ;;  %1927 = vmatpush2.msra.mxu1 %v1861_v61 }
 0x63e   : > { %2235 = vmatprep.subr.mxu0 %v2377_v9  ;;  %1928 = vmatprep.subr.mxu1 %v2377_v9 }
 0x63f   : > { %2236 = vmatpush3.msra.mxu0 %v1740_v15  ;;  %1929 = vmatpush2.msra.mxu1 %v1860_v62  ;;  %v2052_v15 = vld [vmem:[%s2904_s10] ss:$0 sm:$0xff] }
 0x640   : > { %2237 = vmatprep.subr.mxu0 %v2377_v9  ;;  %1930 = vmatprep.subr.mxu1 %v2377_v9 }
 0x641   : > { %2238 = vmatpush3.msra.mxu0 %v1739_v16  ;;  %1931 = vmatpush2.msra.mxu1 %v1859_v1 }
 0x642   : > { %2239 = vmatprep.subr.mxu0 %v2377_v9  ;;  %1932 = vmatprep.subr.mxu1 %v2377_v9 }
 0x643   : > { %2240 = vmatpush3.msra.mxu0 %v1738_v25 }
 0x644   : > { %2241 = vmatprep.subr.mxu0 %v2377_v9 }
 0x645   : > { %2242 = vmatpush3.msra.mxu0 %v1737_v26 }
 0x6bc   : > { %v1686_v2 = vpop.xlane.xlu1 %1685 }
 0x6bd   : > { %v1687_v3 = vmul.f32 0.03125, %v1686_v2  ;;  %v1858_v2 = vld [vmem:[%s2903_s9 + $0x90] sm:$0xff] }
 0x6be   : > { %1933 = vmatpush2.msra.mxu1 %v1858_v2 }
 0x6bf   : > { %v1688_v4 = vsub.f32 %v2680_v63, %v1687_v3  ;;  %v1857_v3 = vld [vmem:[%s2903_s9 + $0x88] sm:$0xff]  ;;  %1934 = vmatprep.subr.mxu1 %v2377_v9 }
 0x6c0   : > { %1935 = vmatpush2.msra.mxu1 %v1857_v3 }
 0x6c1   : > { %v1689_v5 = vmul.f32 %v1688_v4, %v1688_v4  ;;  %v1700_v29 = vmul.f32 %v2048_v27, %v1688_v4  ;;  %1936 = vmatprep.subr.mxu1 %v2377_v9  ;;  %v1856_v4 = vld [vmem:[%s2903_s9 + $0x80] sm:$0xff] }
 0x6c2   : > { %1937 = vmatpush2.msra.mxu1 %v1856_v4 }
 0x6c3   : > { %v1690_v6 = vsel %vm385_vm0, %v1689_v5, 0.0  ;;  %v2050_v5 = vld [vmem:[%s2902_s8] ss:$0 sm:$0xff] }
 0x6c4   : > { %1691 = vadd.xlane.f32.xlu0 %v1690_v6 }
 0x74d   : > { %v1692_v17 = vpop.xlane.xlu0 %1691 }
 0x74e   : > { %v1693_v18 = vmul.f32 0.032258064, %v1692_v17 }
 0x750   : > { %2311 = vrsqrt.f32 %v1693_v18  ;;  %vm1703_vm5 = vcmp.eq.f32.partialorder %v1693_v18, inf  ;;  %v1706_v21 = vand.u32 2147483648, %v1693_v18  ;;  %vm1705_vm6 = vcmp.eq.f32.partialorder %v1693_v18, 0.0 }
 0x75d   : > { %v2312_v19 = vpop.eup %2311 }
 0x75e   : > { %v1702_v20 = vmul.f32 %v2312_v19, %v1693_v18 }
 0x760   : > { %v1704_v22 = vsel %vm1703_vm5, %v1693_v18, %v1702_v20 }
 0x761   : > { %v1707_v23 = vsel %vm1705_vm6, %v1706_v21, %v1704_v22 }
 0x762   : > { %v1708_v24 = vadd.f32 1e-06, %v1707_v23 }
 0x764   : > { %2313 = vrcp.f32 %v1708_v24 }
 0x771   : > { %v2314_v30 = vpop.eup %2313 }
 0x772   : > { %v1710_v33 = vmul.f32 %v2314_v30, %v1700_v29 }
 0x774   : > { %v1717_v34 = vadd.f32 %v2049_v31, %v1710_v33 }
 0x776   : > { %1727 = vrot.lane.b32.xlu0 %v1717_v34, %s2381_s25  ;;  %v1724_v35 = vrot.slane %v1717_v34, 1  ;;  %v1721_v37 = vrot.slane %v1717_v34, 7  ;;  %s2383_s25 = smov [#allocation2]  }
 0x778   : > { %v1725_v36 = vsel %vm1723_vm7, 0.0, %v1724_v35  ;;  %v1722_v39 = vsel %vm1720_vm8, 0.0, %v1721_v37 }
 0x779   : > { %1731 = vrot.lane.b32.xlu1 %v1725_v36, %s2382_s29 }
 0x7e8   : > { %v1728_v38 = vpop.permute.xlu0 %1727 }
 0x7e9   : > { %v1734_v40 = vsel %vm385_vm0, %v1722_v39, %v1728_v38 }
 0x7eb   : > { %v1732_v41 = vpop.permute.xlu1 %1731 }
 0x7ec   : > { %v1736_v42 = vsel %vm1735_vm9, %v1734_v40, %v1732_v41 }
 0x7ed   : > { %2244 = vmatmul.mubr.msk.f32.vlgmr.msra.gmra.mxu0 %vm1756_vm10, %v1736_v42 }
 0x8ad   : > { %v1826_v6 = vpop.f32.mrf.mxu0 }
 0x8ae   : > { %v1827_v7 = vadd.f32 %v2050_v5, %v1826_v6 }
 0x8af   : > { %v2245_v0 = vpop.f32.mrf.mxu0 }
 0x8b0   : > { %v1830_v8 = vmax.f32 %v1827_v7, 0.0 }
 0x8b2   : > { %1836 = vrot.lane.b32.xlu1 %v1830_v8, %s2382_s29  ;;  %v1833_v10 = vrot.slane %v1830_v8, 1  ;;  %v1831_v11 = vrot.slane %v1830_v8, 7  ;;  %s2055_s29 = sshll.u32 %s2465_s21, 7  ;;  %s2319_s21 = sshll.u32 %s2383_s25, 4  ;;  %s2320_s21 = int_to_ptr.vmem [resolvable:$false] %s2319_s21 }
 0x8b3   : > { %s1959_s15 = scalar_lea.hbm %s2905_s11, %s2055_s29  ;;  %s2321_s22 = scalar_lea.vmem %s2320_s21, 256 }
 0x8b4   : > { %v1834_v9 = vsel %vm1723_vm7, 0.0, %v1833_v10  ;;  %v1832_v13 = vsel %vm1720_vm8, 0.0, %v1831_v11  ;;  %p2322_p0 = scmp.lt.s32.totalorder %s1962_s12, %s2320_s21  ;;  %p2323_p1 = scmp.lt.s32.totalorder %s2321_s22, %s2315_s24 }
 0x8b5   : > { %2053 = vmatprep.mubr.msk.f32.mxu1 %vm1735_vm9, %v1834_v9 }
 0x8b6   : > { %p2324_p2 = por %p2323_p1, %p2322_p0 }
 0x8b8   : > { %p2325_p3 = pnand %p2324_p2, %p2318_p13 }
 0x924   : > { %v1837_v12 = vpop.permute.xlu1 %1836 }
 0x925   : > { %v1839_v14 = vsel %vm1735_vm9, %v1832_v13, %v1837_v12 }
 0x926   : > { %1939 = vmatmul.mubr.f32.vlgmr.msra.gmra.mxu1 %v1839_v14 }
 0x9e6   : > { %v1940_v16 = vpop.f32.mrf.mxu1 }
 0x9e7   : > { %v1941_v17 = vadd.f32 %v2052_v15, %v1940_v16 }
 0x9e8   : > { %v1942_v18 = vpop.f32.mrf.mxu1 }
 0x9e9   : > { %v1944_v19 = vmax.f32 %v1941_v17, 0.0 }
 0x9eb   : > { %v1945_v20 = vadd.f32 %v1944_v19, %v2680_v63 }
 0x9ed   : > { %1946 = vst.msk [vmem:[%s377_s30] sm:$0xff] %vm385_vm0, %v1945_v20 }
 0x9ee   : > { %2328 = shalt.err (!%p2325_p3)
}
 0x9ef   : > { %s2329_s13 = scalar_lea.hbm %s1959_s15, 128  ;;  %s2333_s30 = scalar_lea.hbm %s2905_s11, 256 }
 0x9f0   : > { %p2330_p4 = scmp.ne.s32.totalorder %s1959_s15, %s2329_s13  ;;  %p2334_p9 = scmp.lt.s32.totalorder %s1959_s15, %s2905_s11 }
 0x9f1   : > { %p2335_p10 = scmp.lt.s32.totalorder %s2333_s30, %s2329_s13 }
 0x9f2   : > { %p2331_p7 = pnand %p2330_p4, %p2482_p5 }
 0x9f3   : > { %p2336_p11 = por %p2335_p10, %p2334_p9 }
 0x9f4   : > { %p2332_p8 = pneg %p2331_p7 }
 0x9f6   : > { %p2337_p12 = pnand %p2336_p11, %p2332_p8 }
 0x9f8   : > { %2340 = shalt.err (!%p2337_p12)
}
 0x9f9   : > { %2246 = dma.vmem_to_hbm [thread:$0]  (%p2482_p5), %s1962_s12, 128, %s1959_s15, %s1948_s0  }
 0x9fa PF: > { %p2252_p13 = scmp.ge.s32.totalorder %s2375_s20, 2  ;;  %s1973_s24 = sand.u32 1, %s2363_s17  }
 0x9fb   : > { %s1974_s25 = scalar_lea.sflag [#allocation3], %s1973_s24 }
 0x9fc   : > { %p2249_p0 = pnand %p2252_p13, %p2486_p6 }
 0x9fe   : > { %p2250_p1 = pneg %p2249_p0 }
 0xa00   : > { %2358 = dma.done.wait (%p2250_p1), %s1974_s25, 128  }
 0xa01   : > { %2360 = vsyncadd (%p2250_p1), %s1974_s25, 4294967168  ;;  %p21_p2 = scmp.ge.s32.totalorder %s2469_s23, 4   ;;  %s2912_s17 = smov %s2367_s18 }
 0xa02   : > { %s2913_s18 = smov %s2371_s19  ;;  %s2914_s19 = smov %s2480_s26 }
 0xa03   : > { %s2915_s20 = smov %s2469_s23  ;;  %23 = sbr.rel (!%p21_p2) target bundleno = 6 (0x6), region = 99 }
 0xa08   :  { %1979 = vsyncpa [#allocation3], 1 }
 0xa09   :  { %1981 = vsyncpa [#allocation3 + $0x1], 1 }

</bundles_post_ra>
